<compile_context>
chip_gen: v5e
topology: v5e:2x2
jax: 0.10.0
libtpu: 0.0.40
codegen_flags: <defaults>
</compile_context>

<pallas_src>
import functools

import jax
import jax.numpy as jnp
from jax.experimental import pallas as pl
from jax.experimental.pallas import tpu as pltpu


def _conv_bn_swish_kernel(w_ref, x_ref, shift_ref, o_ref, *, tap_offsets, c_in, q_pad):
    """One batch element per grid step.

    w_ref:     (C_out, KH*KW*C_in)  bf16, BN scale pre-folded, tap-major K.
    x_ref:     (C_in, L)            bf16, zero-extended flattened padded image.
    shift_ref: (C_out, 1)           f32, BN shift (beta - mean*scale).
    o_ref:     (C_out, Q_pad)       output dtype; flat (row-major padded grid) pixels.
    """
    acc = jnp.zeros(o_ref.shape, jnp.float32)
    # Shift-and-accumulate direct conv: one small MXU matmul per kernel tap.
    # Slices are static (tap offsets are Python ints), so this unrolls cleanly.
    for t, d in enumerate(tap_offsets):
        w_t = w_ref[:, t * c_in:(t + 1) * c_in]          # (C_out, C_in) bf16
        x_t = x_ref[:, d:d + q_pad]                       # (C_in, Q_pad) bf16
        acc = acc + jnp.dot(w_t, x_t, preferred_element_type=jnp.float32)
    # BN shift (scale already folded into w) + Swish, fused before the only store.
    y = acc + shift_ref[...]
    y = y * jax.nn.sigmoid(y)                             # EUP logistic path
    o_ref[...] = y.astype(o_ref.dtype)


def conv_block_forward(x, conv_w, bn_gamma, bn_beta, bn_mean, bn_var,
                       *, stride=1, padding=0, eps=1e-5):
    """ConvBlock forward: Conv2d(bias=False) -> BatchNorm2d (running stats) -> Swish.

    x: (N, C_in, H, W), conv_w: (C_out, C_in, KH, KW).  Returns (N, C_out, OH, OW).
    """
    N, C_in, H, W = x.shape
    C_out, _, KH, KW = conv_w.shape
    H_pad, W_pad = H + 2 * padding, W + 2 * padding
    OH = (H_pad - KH) // stride + 1
    OW = (W_pad - KW) // stride + 1

    # Flat-grid conv geometry: compute a stride-1 "full grid" conv over every
    # (r, c) in [0, H_pad) x [0, W_pad) of an image zero-extended to (He, We),
    # so each tap (i, j) reads a contiguous flat slice at offset i*We + j.
    LANE = 128
    We = W_pad + KW - 1
    He = H_pad + KH - 1
    Q = H_pad * We                                   # flat pixels actually used
    Q_pad = ((Q + LANE - 1) // LANE) * LANE          # lane-dense compute/store width
    d_max = (KH - 1) * We + (KW - 1)
    He_alloc = max(He, -(-(d_max + Q_pad) // We))    # enough zero rows for max slice
    L = He_alloc * We

    # Zero-extended, bf16, flattened input (one fused XLA pass over x; no 9x blowup).
    x_ext = jnp.zeros((N, C_in, He_alloc, We), jnp.bfloat16)
    x_ext = x_ext.at[:, :, padding:padding + H, padding:padding + W].set(
        x.astype(jnp.bfloat16))
    x_flat = x_ext.reshape(N, C_in, L)               # free view

    # Fold BN scale into the (tap-major) weight matrix, keep shift separate (f32).
    K = KH * KW * C_in
    scale = bn_gamma / jnp.sqrt(bn_var + eps)
    w_mat = (conv_w.transpose(0, 2, 3, 1).reshape(C_out, K)
             * scale[:, None]).astype(jnp.bfloat16)
    shift = (bn_beta - bn_mean * scale).astype(jnp.float32).reshape(C_out, 1)

    tap_offsets = tuple(i * We + j for i in range(KH) for j in range(KW))

    kernel = functools.partial(_conv_bn_swish_kernel,
                               tap_offsets=tap_offsets, c_in=C_in, q_pad=Q_pad)

    out_flat = pl.pallas_call(
        kernel,
        out_shape=jax.ShapeDtypeStruct((N, C_out, Q_pad), x.dtype),
        grid=(N,),
        in_specs=[
            pl.BlockSpec((C_out, K), lambda n: (0, 0)),      # weights, resident
            pl.BlockSpec((None, C_in, L), lambda n: (n, 0, 0)),  # one image / step
            pl.BlockSpec((C_out, 1), lambda n: (0, 0)),      # BN shift, resident
        ],
        out_specs=pl.BlockSpec((None, C_out, Q_pad), lambda n: (n, 0, 0)),
        compiler_params=pltpu.CompilerParams(
            dimension_semantics=("parallel",),  # images independent -> 2 TCs on v7x
        ),
    )(w_mat, x_flat, shift)

    # Extract the valid pixels: lanes [0, Q) view as (H_pad, We), then keep the
    # stride-sampled (OH, OW) window.  Strided slice + view reshape only (no HBM
    # transpose pass); junk border lanes (zero-padded columns / Q..Q_pad) are
    # computed but never read.
    y_grid = out_flat[:, :, :Q].reshape(N, C_out, H_pad, We)
    out = y_grid[:, :, 0:(OH - 1) * stride + 1:stride, 0:(OW - 1) * stride + 1:stride]
    return out


if __name__ == "__main__":
    key = jax.random.PRNGKey(0)
    k1, k2, k3, k4, k5, k6 = jax.random.split(key, 6)

    # ConvBlock(in_channel=4, out_channel=8, kernel_size=3, padding=1, stride=1, activation='swish')
    N, C_in, H, W = 2, 4, 16, 16
    C_out, KH, KW = 8, 3, 3
    stride, padding = 1, 1

    x = jax.random.normal(k1, (N, C_in, H, W), dtype=jnp.float32)
    conv_w = jax.random.normal(k2, (C_out, C_in, KH, KW), dtype=jnp.float32) * 0.1
    gamma = 1.0 + 0.1 * jax.random.normal(k3, (C_out,), dtype=jnp.float32)
    beta = 0.1 * jax.random.normal(k4, (C_out,), dtype=jnp.float32)
    mean = 0.1 * jax.random.normal(k5, (C_out,), dtype=jnp.float32)
    var = jax.random.uniform(k6, (C_out,), dtype=jnp.float32, minval=0.5, maxval=1.5)

    y = conv_block_forward(x, conv_w, gamma, beta, mean, var,
                           stride=stride, padding=padding)
    jax.block_until_ready(y)

    # Pure-JAX f32 reference: Conv2d(bias=False) + BatchNorm2d(running stats) + Swish.
    y_conv = jax.lax.conv_general_dilated(
        x, conv_w, window_strides=(stride, stride),
        padding=[(padding, padding), (padding, padding)],
        dimension_numbers=("NCHW", "OIHW", "NCHW"),
        precision=jax.lax.Precision.HIGHEST)
    eps = 1e-5
    s = gamma / jnp.sqrt(var + eps)
    b = beta - mean * s
    y_bn = y_conv * s.reshape(1, -1, 1, 1) + b.reshape(1, -1, 1, 1)
    y_ref = y_bn * jax.nn.sigmoid(y_bn)

    assert y.shape == y_ref.shape and y.dtype == x.dtype
    # Kernel uses bf16 MXU operands with f32 accumulation (intentional, for HBM
    # bandwidth); tolerance is relaxed vs. the f32 HIGHEST-precision reference.
    max_err = float(jnp.max(jnp.abs(y - y_ref)))
    assert max_err < 2e-2, f"max abs err {max_err}"
    print("KERNEL_OK")
</pallas_src>

<mosaic_0001>
module attributes {stable_mosaic.version = 11 : i64} {
  func.func @_conv_bn_swish_kernel(%arg0: i32, %arg1: memref<8x36xbf16, #tpu.memory_space<vmem>>, %arg2: memref<1x4x440xbf16, #tpu.memory_space<vmem>>, %arg3: memref<8x1xf32, #tpu.memory_space<vmem>>, %arg4: memref<1x8x384xf32, #tpu.memory_space<vmem>>) attributes {dimension_semantics = [#tpu.dimension_semantics<parallel>], iteration_bounds = array<i64: 2>, scalar_prefetch = 0 : i64, scratch_operands = 0 : i64, tpu.core_type = #tpu.core_type<tc>, window_params = [{pipeline_mode = #tpu.pipeline_mode<synchronous>, transform_indices = @transform_0, window_bounds = array<i64: 8, 36>}, {transform_indices = @transform_1, window_bounds = array<i64: 1, 4, 440>}, {pipeline_mode = #tpu.pipeline_mode<synchronous>, transform_indices = @transform_2, window_bounds = array<i64: 8, 1>}, {transform_indices = @transform_3, window_bounds = array<i64: 1, 8, 384>}]} {
    %cst = arith.constant 0.000000e+00 : f32
    %0 = vector.broadcast %cst : f32 to vector<8x384xf32>
    %c0 = arith.constant 0 : index
    %c0_0 = arith.constant 0 : index
    %1 = vector.load %arg1[%c0, %c0_0] : memref<8x36xbf16, #tpu.memory_space<vmem>>, vector<8x4xbf16>
    %c0_1 = arith.constant 0 : index
    %c0_2 = arith.constant 0 : index
    %c0_3 = arith.constant 0 : index
    %2 = vector.load %arg2[%c0_1, %c0_2, %c0_3] : memref<1x4x440xbf16, #tpu.memory_space<vmem>>, vector<1x4x384xbf16>
    %3 = vector.shape_cast %2 : vector<1x4x384xbf16> to vector<4x384xbf16>
    %cst_4 = arith.constant dense<0.000000e+00> : vector<8x384xf32>
    %4 = tpu.matmul %1, %3, %cst_4 {dimension_numbers = #tpu.dot_dimension_numbers<[1], [0], [0], [1], [0, 0, 1, 1], [], []>} : vector<8x4xbf16>, vector<4x384xbf16>, vector<8x384xf32> -> vector<8x384xf32>
    %5 = arith.addf %0, %4 : vector<8x384xf32>
    %c0_5 = arith.constant 0 : index
    %c4 = arith.constant 4 : index
    %6 = vector.load %arg1[%c0_5, %c4] : memref<8x36xbf16, #tpu.memory_space<vmem>>, vector<8x4xbf16>
    %c0_6 = arith.constant 0 : index
    %c0_7 = arith.constant 0 : index
    %c1 = arith.constant 1 : index
    %7 = vector.load %arg2[%c0_6, %c0_7, %c1] : memref<1x4x440xbf16, #tpu.memory_space<vmem>>, vector<1x4x384xbf16>
    %8 = vector.shape_cast %7 : vector<1x4x384xbf16> to vector<4x384xbf16>
    %cst_8 = arith.constant dense<0.000000e+00> : vector<8x384xf32>
    %9 = tpu.matmul %6, %8, %cst_8 {dimension_numbers = #tpu.dot_dimension_numbers<[1], [0], [0], [1], [0, 0, 1, 1], [], []>} : vector<8x4xbf16>, vector<4x384xbf16>, vector<8x384xf32> -> vector<8x384xf32>
    %10 = arith.addf %5, %9 : vector<8x384xf32>
    %c0_9 = arith.constant 0 : index
    %c8 = arith.constant 8 : index
    %11 = vector.load %arg1[%c0_9, %c8] : memref<8x36xbf16, #tpu.memory_space<vmem>>, vector<8x4xbf16>
    %c0_10 = arith.constant 0 : index
    %c0_11 = arith.constant 0 : index
    %c2 = arith.constant 2 : index
    %12 = vector.load %arg2[%c0_10, %c0_11, %c2] : memref<1x4x440xbf16, #tpu.memory_space<vmem>>, vector<1x4x384xbf16>
    %13 = vector.shape_cast %12 : vector<1x4x384xbf16> to vector<4x384xbf16>
    %cst_12 = arith.constant dense<0.000000e+00> : vector<8x384xf32>
    %14 = tpu.matmul %11, %13, %cst_12 {dimension_numbers = #tpu.dot_dimension_numbers<[1], [0], [0], [1], [0, 0, 1, 1], [], []>} : vector<8x4xbf16>, vector<4x384xbf16>, vector<8x384xf32> -> vector<8x384xf32>
    %15 = arith.addf %10, %14 : vector<8x384xf32>
    %c0_13 = arith.constant 0 : index
    %c12 = arith.constant 12 : index
    %16 = vector.load %arg1[%c0_13, %c12] : memref<8x36xbf16, #tpu.memory_space<vmem>>, vector<8x4xbf16>
    %c0_14 = arith.constant 0 : index
    %c0_15 = arith.constant 0 : index
    %c20 = arith.constant 20 : index
    %17 = vector.load %arg2[%c0_14, %c0_15, %c20] : memref<1x4x440xbf16, #tpu.memory_space<vmem>>, vector<1x4x384xbf16>
    %18 = vector.shape_cast %17 : vector<1x4x384xbf16> to vector<4x384xbf16>
    %cst_16 = arith.constant dense<0.000000e+00> : vector<8x384xf32>
    %19 = tpu.matmul %16, %18, %cst_16 {dimension_numbers = #tpu.dot_dimension_numbers<[1], [0], [0], [1], [0, 0, 1, 1], [], []>} : vector<8x4xbf16>, vector<4x384xbf16>, vector<8x384xf32> -> vector<8x384xf32>
    %20 = arith.addf %15, %19 : vector<8x384xf32>
    %c0_17 = arith.constant 0 : index
    %c16 = arith.constant 16 : index
    %21 = vector.load %arg1[%c0_17, %c16] : memref<8x36xbf16, #tpu.memory_space<vmem>>, vector<8x4xbf16>
    %c0_18 = arith.constant 0 : index
    %c0_19 = arith.constant 0 : index
    %c21 = arith.constant 21 : index
    %22 = vector.load %arg2[%c0_18, %c0_19, %c21] : memref<1x4x440xbf16, #tpu.memory_space<vmem>>, vector<1x4x384xbf16>
    %23 = vector.shape_cast %22 : vector<1x4x384xbf16> to vector<4x384xbf16>
    %cst_20 = arith.constant dense<0.000000e+00> : vector<8x384xf32>
    %24 = tpu.matmul %21, %23, %cst_20 {dimension_numbers = #tpu.dot_dimension_numbers<[1], [0], [0], [1], [0, 0, 1, 1], [], []>} : vector<8x4xbf16>, vector<4x384xbf16>, vector<8x384xf32> -> vector<8x384xf32>
    %25 = arith.addf %20, %24 : vector<8x384xf32>
    %c0_21 = arith.constant 0 : index
    %c20_22 = arith.constant 20 : index
    %26 = vector.load %arg1[%c0_21, %c20_22] : memref<8x36xbf16, #tpu.memory_space<vmem>>, vector<8x4xbf16>
    %c0_23 = arith.constant 0 : index
    %c0_24 = arith.constant 0 : index
    %c22 = arith.constant 22 : index
    %27 = vector.load %arg2[%c0_23, %c0_24, %c22] : memref<1x4x440xbf16, #tpu.memory_space<vmem>>, vector<1x4x384xbf16>
    %28 = vector.shape_cast %27 : vector<1x4x384xbf16> to vector<4x384xbf16>
    %cst_25 = arith.constant dense<0.000000e+00> : vector<8x384xf32>
    %29 = tpu.matmul %26, %28, %cst_25 {dimension_numbers = #tpu.dot_dimension_numbers<[1], [0], [0], [1], [0, 0, 1, 1], [], []>} : vector<8x4xbf16>, vector<4x384xbf16>, vector<8x384xf32> -> vector<8x384xf32>
    %30 = arith.addf %25, %29 : vector<8x384xf32>
    %c0_26 = arith.constant 0 : index
    %c24 = arith.constant 24 : index
    %31 = vector.load %arg1[%c0_26, %c24] : memref<8x36xbf16, #tpu.memory_space<vmem>>, vector<8x4xbf16>
    %c0_27 = arith.constant 0 : index
    %c0_28 = arith.constant 0 : index
    %c40 = arith.constant 40 : index
    %32 = vector.load %arg2[%c0_27, %c0_28, %c40] : memref<1x4x440xbf16, #tpu.memory_space<vmem>>, vector<1x4x384xbf16>
    %33 = vector.shape_cast %32 : vector<1x4x384xbf16> to vector<4x384xbf16>
    %cst_29 = arith.constant dense<0.000000e+00> : vector<8x384xf32>
    %34 = tpu.matmul %31, %33, %cst_29 {dimension_numbers = #tpu.dot_dimension_numbers<[1], [0], [0], [1], [0, 0, 1, 1], [], []>} : vector<8x4xbf16>, vector<4x384xbf16>, vector<8x384xf32> -> vector<8x384xf32>
    %35 = arith.addf %30, %34 : vector<8x384xf32>
    %c0_30 = arith.constant 0 : index
    %c28 = arith.constant 28 : index
    %36 = vector.load %arg1[%c0_30, %c28] : memref<8x36xbf16, #tpu.memory_space<vmem>>, vector<8x4xbf16>
    %c0_31 = arith.constant 0 : index
    %c0_32 = arith.constant 0 : index
    %c41 = arith.constant 41 : index
    %37 = vector.load %arg2[%c0_31, %c0_32, %c41] : memref<1x4x440xbf16, #tpu.memory_space<vmem>>, vector<1x4x384xbf16>
    %38 = vector.shape_cast %37 : vector<1x4x384xbf16> to vector<4x384xbf16>
    %cst_33 = arith.constant dense<0.000000e+00> : vector<8x384xf32>
    %39 = tpu.matmul %36, %38, %cst_33 {dimension_numbers = #tpu.dot_dimension_numbers<[1], [0], [0], [1], [0, 0, 1, 1], [], []>} : vector<8x4xbf16>, vector<4x384xbf16>, vector<8x384xf32> -> vector<8x384xf32>
    %40 = arith.addf %35, %39 : vector<8x384xf32>
    %c0_34 = arith.constant 0 : index
    %c32 = arith.constant 32 : index
    %41 = vector.load %arg1[%c0_34, %c32] : memref<8x36xbf16, #tpu.memory_space<vmem>>, vector<8x4xbf16>
    %c0_35 = arith.constant 0 : index
    %c0_36 = arith.constant 0 : index
    %c42 = arith.constant 42 : index
    %42 = vector.load %arg2[%c0_35, %c0_36, %c42] : memref<1x4x440xbf16, #tpu.memory_space<vmem>>, vector<1x4x384xbf16>
    %43 = vector.shape_cast %42 : vector<1x4x384xbf16> to vector<4x384xbf16>
    %cst_37 = arith.constant dense<0.000000e+00> : vector<8x384xf32>
    %44 = tpu.matmul %41, %43, %cst_37 {dimension_numbers = #tpu.dot_dimension_numbers<[1], [0], [0], [1], [0, 0, 1, 1], [], []>} : vector<8x4xbf16>, vector<4x384xbf16>, vector<8x384xf32> -> vector<8x384xf32>
    %45 = arith.addf %40, %44 : vector<8x384xf32>
    %c0_38 = arith.constant 0 : index
    %c0_39 = arith.constant 0 : index
    %46 = vector.load %arg3[%c0_38, %c0_39] : memref<8x1xf32, #tpu.memory_space<vmem>>, vector<8x1xf32>
    %47 = vector.broadcast %46 : vector<8x1xf32> to vector<8x384xf32>
    %48 = arith.addf %45, %47 : vector<8x384xf32>
    %49 = arith.negf %48 : vector<8x384xf32>
    %50 = math.exp %49 : vector<8x384xf32>
    %cst_40 = arith.constant 1.000000e+00 : f32
    %51 = vector.broadcast %cst_40 : f32 to vector<8x384xf32>
    %52 = arith.addf %51, %50 : vector<8x384xf32>
    %53 = arith.divf %51, %52 : vector<8x384xf32>
    %54 = arith.mulf %48, %53 : vector<8x384xf32>
    %c0_41 = arith.constant 0 : index
    %c0_42 = arith.constant 0 : index
    %c0_43 = arith.constant 0 : index
    %55 = vector.load %arg4[%c0_41, %c0_42, %c0_43] : memref<1x8x384xf32, #tpu.memory_space<vmem>>, vector<1x8x384xf32>
    %56 = vector.shape_cast %55 : vector<1x8x384xf32> to vector<8x384xf32>
    %57 = vector.shape_cast %54 : vector<8x384xf32> to vector<1x8x384xf32>
    tpu.vector_store %arg4[%c0_41, %c0_42, %c0_43], %57 {strides = array<i32>} : memref<1x8x384xf32, #tpu.memory_space<vmem>>, vector<1x8x384xf32>,
    return
  }
  func.func @transform_0(%arg0: i32) -> (i32, i32) {
    %c0_i32 = arith.constant 0 : i32
    %c0_i32_0 = arith.constant 0 : i32
    %c0_i32_1 = arith.constant 0 : i32
    return %c0_i32, %c0_i32_0 : i32, i32
  }
  func.func @transform_1(%arg0: i32) -> (i32, i32, i32) {
    %c0_i32 = arith.constant 0 : i32
    %c0_i32_0 = arith.constant 0 : i32
    %c0_i32_1 = arith.constant 0 : i32
    return %arg0, %c0_i32, %c0_i32_0 : i32, i32, i32
  }
  func.func @transform_2(%arg0: i32) -> (i32, i32) {
    %c0_i32 = arith.constant 0 : i32
    %c0_i32_0 = arith.constant 0 : i32
    %c0_i32_1 = arith.constant 0 : i32
    return %c0_i32, %c0_i32_0 : i32, i32
  }
  func.func @transform_3(%arg0: i32) -> (i32, i32, i32) {
    %c0_i32 = arith.constant 0 : i32
    %c0_i32_0 = arith.constant 0 : i32
    %c0_i32_1 = arith.constant 0 : i32
    return %arg0, %c0_i32, %c0_i32_0 : i32, i32, i32
  }
}

</mosaic_0001>

<bundles_post_ra>
// kernel: tpu_custom_call.1
= control target key start
LH: loop header
LB: loop body
LE: loop exit
PB: predicated region body
PF: predicated region fallthrough
CT: control target
= control target key end

     0   :  { %8 = vsyncpa [#allocation3], 0  ;;  %s1593_s0 = inlined_call_operand.vmem [shape: bf16[8,36], index: 0, kind: input, shape index: {}]   ;;  %s1594_s1 = inlined_call_operand.hbm [shape: bf16[2,4,440], index: 1, kind: input, shape index: {}]   ;;  %s1595_s2 = inlined_call_operand.vmem [shape: f32[8,1], index: 2, kind: input, shape index: {}]   ;;  %s1596_s3 = inlined_call_operand.hbm [shape: f32[2,8,384], index: 3, kind: output, shape index: {}]  }
   0x1   :  { %10 = vsyncpa [#allocation3 + $0x1], 0 }
   0x2   :  { %11 = vsyncpa [#allocation4], 0 }
   0x3   :  { %13 = vsyncpa [#allocation4 + $0x1], 0  ;;  %s1320_s12 = smov 0   ;;  %s1322_s13 = smov 0  }
   0x4   :  { %s1324_s14 = smov 0   ;;  %s1326_s15 = smov 0  }
   0x5 LB: > { %s1341_s16 = sadd.s32 4294967295, %s1282_s15   ;;  %s1066_s17 = sadd.s32 4294967294, %s1282_s15   ;;  %s1282_s15 = sphi %s1326_s15, %s1606_s15   ;;  %s1278_s14 = sphi %s1324_s14, %s1605_s14   ;;  %s1274_s13 = sphi %s1322_s13, %s1604_s13   ;;  %s1270_s12 = sphi %s1320_s12, %s1603_s12  }
   0x6   : > { %s1345_s18 = sadd.s32 1, %s1282_s15   ;;  %s47_s19 = sadd.s32 1, %s1278_s14 }
   0x7   : > { %s44_s20 = ssub.s32 %s1282_s15, %s1345_s18  ;;  %p54_p0 = scmp.ne.s32.totalorder %s1278_s14, %s1274_s13 }
   0x8   : > { %p45_p1 = scmp.eq.s32.totalorder %s44_s20, 0  ;;  %p55_p2 = scmp.eq.s32.totalorder %s1282_s15, 0 }
   0x9   : > { %p60_p3 = scmp.ne.s32.totalorder %s1274_s13, %s1270_s12  ;;  %p61_p4 = scmp.eq.s32.totalorder %s1341_s16, 0 }
   0xa   : > { %s1357_s21 = scalar_select %p45_p1, %s1278_s14, %s47_s19  }
   0xb   : > { %p1359_p5 = por %p55_p2, %p54_p0  ;;  %p1363_p6 = por %p61_p4, %p60_p3 }
   0xc   : > { %p105_p7 = scmp.eq.s32.totalorder %s1341_s16, 1  ;;  %p111_p8 = scmp.eq.s32.totalorder %s1066_s17, 1 }
   0xd   : > { %p1122_p10 = scmp.lt.s32.totalorder %s1282_s15, 2  ;;  %s137_s26 = sand.u32 1, %s1278_s14  }
   0xe   : > { %p1370_p11 = por %p105_p7, %p54_p0  ;;  %p1374_p12 = por %p111_p8, %p60_p3 }
   0xf   : > { %s1107_s27 = sshll.u32 %s1282_s15, 3  ;;  %s1069_s28 = sshll.u32 %s137_s26, 3 }
  0x10   : > { %s146_s4 = scalar_lea.hbm %s1594_s1, %s1107_s27  ;;  %s141_s6 = scalar_lea.vmem [#allocation2], %s1069_s28 }
  0x11   : > { %s148_s5 = sshll.u32 %s146_s4, 4  ;;  %s150_s7 = sshll.u32 %s141_s6, 4  ;;  %s149_s5 = int_to_ptr.hbm [resolvable:$true] %s148_s5  ;;  %s151_s7 = int_to_ptr.vmem [resolvable:$true] %s150_s7 }
  0x12   : > { %p1385_p13 = pnand %p1122_p10, %p1359_p5  ;;  %p1072_p0 = scmp.ge.s32.totalorder %s1282_s15, 1 }
  0x13   : > { %p155_p1 = scmp.lt.s32.totalorder %s1282_s15, 3  ;;  %s138_s9 = scalar_lea.sflag [#allocation3], %s137_s26 }
  0x14   : > { %s1186_s10 = sshra.s32 %s149_s5, 4  ;;  %p1190_p3 = pneg %p1385_p13  ;;  %s1187_s10 = int_to_ptr.hbm [resolvable:$true] %s1186_s10 }
  0x15   : > { %s1188_s11 = scalar_lea.hbm %s1187_s10, 8  ;;  %s1193_s20 = scalar_lea.hbm %s1594_s1, 16 }
  0x16   : > { %p1189_p2 = scmp.ne.s32.totalorder %s1187_s10, %s1188_s11  ;;  %p1194_p5 = scmp.lt.s32.totalorder %s1187_s10, %s1594_s1 }
  0x17   : > { %p1195_p8 = scmp.lt.s32.totalorder %s1193_s20, %s1188_s11 }
  0x18   : > { %p1191_p4 = pnand %p1190_p3, %p1189_p2 }
  0x19   : > { %p1196_p10 = por %p1195_p8, %p1194_p5 }
  0x1a   : > { %p1192_p7 = pneg %p1191_p4 }
  0x1c   : > { %p1197_p9 = pnand %p1196_p10, %p1192_p7 }
  0x1e   : > { %1200 = shalt.err (!%p1197_p9)
}
  0x1f   : > { %1117 = dma.hbm_to_vmem [thread:$0]  (!%p1385_p13), %s149_s5, 128, %s151_s7, %s138_s9  }
  0x20   : > { %p156_p2 = pnand %p1072_p0, %p155_p1 }
  0x21   : > { %s1406_s26 = sand.u32 (!%p156_p2), 1, %s1274_s13  }
  0x22   : > { %159 = sbr.rel (%p156_p2) target bundleno = 443 (0x1bb), region = 32  ;;  %s1073_s28 = sshll.u32 (!%p156_p2), %s1406_s26, 3 }
  0x23   : > { %s162_s29 = scalar_lea.sflag (!%p156_p2), [#allocation3], %s1406_s26  ;;  %s165_s30 = scalar_lea.vmem (!%p156_p2), [#allocation2], %s1073_s28 }
  0x27   : > { %1261 = dma.done.wait (%p1363_p6), %s162_s29, 128  }
  0x28   : > { %1263 = vsyncadd (%p1363_p6), %s162_s29, 4294967168  ;;  %v1417_v0 = vld [vmem:[%s1593_s0] sm:$0xf]  ;;  %v1419_v1 = vld [vmem:[%s165_s30] sm:$0xff]  ;;  %s1284_s6 = smov 124   ;;  %s1285_s7 = smov 127  }
  0x29   : > { %v194_v2 = vunpack.c.l.b16 %v1417_v0  ;;  %199 = vst [vmem:[#allocation1] ss:$4 sm:$0xff] %v1419_v1  ;;  %v191_v4 = vld [vmem:[%s165_s30] sm:$0x3f]  ;;  %v326_v9 = vld [vmem:[%s1593_s0] sm:$0xf] }
  0x2a   : > { %v329_v10 = vunpack.c.l.b16 %v326_v9  ;;  %s1286_s9 = smov 120   ;;  %v409_v15 = vld [vmem:[%s1593_s0] sm:$0xf]  ;;  %s1287_s17 = smov 126   ;;  %vm224_vm0 = vcmask 1041408   ;;  %vm220_vm1 = vcmask 31744  }
  0x2b   : > { %v195_v3 = vpack.c.b16 %v194_v2, %v194_v2  ;;  %v412_v20 = vunpack.c.l.b16 %v409_v15  ;;  %s1288_s19 = smov 108   ;;  %s1289_s20 = smov 116   ;;  %v492_v26 = vld [vmem:[%s1593_s0] sm:$0xf]  ;;  %vm216_vm2 = vcmask 1039360   ;;  %vm351_vm3 = vcmask 1031168  }
  0x2c   : > { %v330_v13 = vpack.c.b16 %v329_v10, %v329_v10  ;;  %v495_v29 = vunpack.c.l.b16 %v492_v26  ;;  %s1290_s28 = smov 107   ;;  %s1291_s29 = smov 112   ;;  %v575_v41 = vld [vmem:[%s1593_s0] sm:$0xf]  ;;  %vm434_vm4 = vcmask 883712   ;;  %vm517_vm5 = vcmask 875520  }
  0x2d   : > { %196 = vrot.lane.b32.xlu1 %v195_v3, %s1284_s6  ;;  %v413_v21 = vpack.c.b16 %v412_v20, %v412_v20  ;;  %v658_v42 = vld [vmem:[%s1593_s0] sm:$0xf]  ;;  %v578_v43 = vunpack.c.l.b16 %v575_v41  ;;  %s1293_s23 = smov 88   ;;  %s1294_s8 = smov 104   ;;  %vm600_vm6 = vcmask 867328   ;;  %vm683_vm7 = vcmask 719872  }
  0x2e   : > { %v496_v32 = vpack.c.b16 %v495_v29, %v495_v29  ;;  %v661_v44 = vunpack.c.l.b16 %v658_v42  ;;  %v741_v51 = vld [vmem:[%s1593_s0] sm:$0xf]  ;;  %s1295_s11 = smov 87   ;;  %s1297_s22 = smov 86   ;;  %vm766_vm8 = vcmask 711680   ;;  %vm849_vm9 = vcmask 703488  }
  0x2f   : > { %v579_v45 = vpack.c.b16 %v578_v43, %v578_v43  ;;  %v744_v52 = vunpack.c.l.b16 %v741_v51  ;;  %v824_v55 = vld [vmem:[%s1593_s0] sm:$0xf]  ;;  %s1298_s27 = smov 96   ;;  %s1108_s30 = smul.u32 24, %s1406_s26 }
  0x30   : > { %v204_v5 = vld.sshfl [vmem:[#allocation1 + $0x10] sm:$0xff pattern:$0x73625140]  ;;  %v200_v6 = vld.sshfl [vmem:[#allocation1] sm:$0xff pattern:$0x73625140]  ;;  %v662_v48 = vpack.c.b16 %v661_v44, %v661_v44  ;;  %v827_v56 = vunpack.c.l.b16 %v824_v55 }
  0x31   : > { %212 = vrot.lane.b32.xlu0 %v204_v5, %s1285_s7  ;;  %v206_v7 = vld.sshfl [vmem:[#allocation1 + $0x18] sm:$0xff pattern:$0x73625140]  ;;  %v202_v8 = vld.sshfl [vmem:[#allocation1 + $0x8] sm:$0xff pattern:$0x73625140]  ;;  %v745_v53 = vpack.c.b16 %v744_v52, %v744_v52 }
  0x32   : > { %210 = vrot.lane.b32.xlu2 %v202_v8, %s1285_s7  ;;  %274 = vst [vmem:[#allocation1] ss:$4 sm:$0xff] %v191_v4  ;;  %v828_v58 = vpack.c.b16 %v827_v56, %v827_v56  ;;  %s1109_s4 = smul.u32 24, %s1341_s16 }
  0x34   : > { %s991_s6 = scalar_lea.hbm %s1596_s3, %s1109_s4 }
  0x35   : > { %208 = vrot.lane.b32.xlu1 %v200_v6, %s1285_s7 }
  0x39   : > { %214 = vrot.lane.b32.xlu0 %v206_v7, %s1285_s7  ;;  %v1426_v11 = vld.sshfl [vmem:[#allocation1] sm:$0xff pattern:$0x73625140]  ;;  %v1428_v12 = vld.sshfl [vmem:[#allocation1 + $0x8] sm:$0xff pattern:$0x73625140] }
  0x3a   : > { %v1430_v14 = vld.sshfl [vmem:[#allocation1 + $0x10] sm:$0xff pattern:$0x73625140]  ;;  %s1292_s7 = smov 106   ;;  %v281_v54 = vsel %vm224_vm0, %v1426_v11, 0  ;;  %v283_v9 = vsel %vm224_vm0, %v1428_v12, 0 }
  0x3b   : > { %334 = vst [vmem:[#allocation1] ss:$4 sm:$0xff] %v1419_v1  ;;  %294 = vmatpush.bf16.msra.mxu3 %v281_v54  ;;  %v285_v4 = vsel %vm224_vm0, %v1430_v14, 0 }
  0x3d   : > { %331 = vrot.lane.b32.xlu1 %v330_v13, %s1286_s9  ;;  %s980_s9 = scalar_lea.sflag [#allocation4], %s1406_s26 }
  0x3e   : > { %1077 = vmatmul.msk.bf16.vlgmr.msra.gmra.mxu3 %vm220_vm1, %v1417_v0 }
  0x42   : > { %v337_v16 = vld.sshfl [vmem:[#allocation1 + $0x8] sm:$0xff pattern:$0x73625140]  ;;  %v339_v17 = vld.sshfl [vmem:[#allocation1 + $0x10] sm:$0xff pattern:$0x73625140] }
  0x43   : > { %345 = vrot.lane.b32.xlu0 %v337_v16, %s1287_s17  ;;  %v341_v18 = vld.sshfl [vmem:[#allocation1 + $0x18] sm:$0xff pattern:$0x73625140]  ;;  %v335_v19 = vld.sshfl [vmem:[#allocation1] sm:$0xff pattern:$0x73625140] }
  0x44   : > { %343 = vrot.lane.b32.xlu2 %v335_v19, %s1287_s17  ;;  %417 = vst [vmem:[#allocation1] ss:$4 sm:$0xff] %v1419_v1 }
  0x4b   : > { %349 = vrot.lane.b32.xlu0 %v341_v18, %s1287_s17  ;;  %v424_v22 = vld.sshfl [vmem:[#allocation1 + $0x18] sm:$0xff pattern:$0x73625140]  ;;  %v422_v23 = vld.sshfl [vmem:[#allocation1 + $0x10] sm:$0xff pattern:$0x73625140] }
  0x4c   : > { %430 = vrot.lane.b32.xlu1 %v422_v23, %s1288_s19  ;;  %414 = vrot.lane.b32.xlu2 %v413_v21, %s1289_s20  ;;  %v420_v24 = vld.sshfl [vmem:[#allocation1 + $0x8] sm:$0xff pattern:$0x73625140]  ;;  %v418_v25 = vld.sshfl [vmem:[#allocation1] sm:$0xff pattern:$0x73625140] }
  0x4d   : > { %500 = vst [vmem:[#allocation1] ss:$4 sm:$0xff] %v1419_v1  ;;  %s1236_s20 = scalar_lea.hbm %s1596_s3, 48 }
  0x53   : > { %428 = vrot.lane.b32.xlu0 %v420_v24, %s1288_s19 }
  0x54   : > { %426 = vrot.lane.b32.xlu1 %v418_v25, %s1288_s19  ;;  %347 = vrot.lane.b32.xlu2 %v339_v17, %s1287_s17  ;;  %v505_v27 = vld.sshfl [vmem:[#allocation1 + $0x10] sm:$0xff pattern:$0x73625140]  ;;  %v507_v28 = vld.sshfl [vmem:[#allocation1 + $0x18] sm:$0xff pattern:$0x73625140] }
  0x55   : > { %v501_v30 = vld.sshfl [vmem:[#allocation1] sm:$0xff pattern:$0x73625140]  ;;  %v503_v31 = vld.sshfl [vmem:[#allocation1 + $0x8] sm:$0xff pattern:$0x73625140] }
  0x56   : > { %583 = vst [vmem:[#allocation1] ss:$4 sm:$0xff] %v1419_v1  ;;  %s1296_s17 = smov 100  }
  0x5b   : > { %513 = vrot.lane.b32.xlu0 %v505_v27, %s1290_s28 }
  0x5c   : > { %515 = vrot.lane.b32.xlu1 %v507_v28, %s1290_s28  ;;  %497 = vrot.lane.b32.xlu2 %v496_v32, %s1291_s29 }
  0x5d   : > { %v584_v33 = vld.sshfl [vmem:[#allocation1] sm:$0xff pattern:$0x73625140]  ;;  %v588_v34 = vld.sshfl [vmem:[#allocation1 + $0x10] sm:$0xff pattern:$0x73625140] }
  0x5e   : > { %v590_v35 = vld.sshfl [vmem:[#allocation1 + $0x18] sm:$0xff pattern:$0x73625140]  ;;  %v586_v36 = vld.sshfl [vmem:[#allocation1 + $0x8] sm:$0xff pattern:$0x73625140] }
  0x5f   : > { %666 = vst [vmem:[#allocation1] ss:$4 sm:$0xff] %v1419_v1 }
  0x63   : > { %509 = vrot.lane.b32.xlu0 %v501_v30, %s1290_s28 }
  0x64   : > { %511 = vrot.lane.b32.xlu1 %v503_v31, %s1290_s28  ;;  %432 = vrot.lane.b32.xlu2 %v424_v22, %s1288_s19 }
  0x66   : > { %v673_v37 = vld.sshfl [vmem:[#allocation1 + $0x18] sm:$0xff pattern:$0x73625140]  ;;  %v667_v38 = vld.sshfl [vmem:[#allocation1] sm:$0xff pattern:$0x73625140] }
  0x67   : > { %v669_v39 = vld.sshfl [vmem:[#allocation1 + $0x8] sm:$0xff pattern:$0x73625140]  ;;  %v671_v40 = vld.sshfl [vmem:[#allocation1 + $0x10] sm:$0xff pattern:$0x73625140] }
  0x68   : > { %749 = vst [vmem:[#allocation1] ss:$4 sm:$0xff] %v1419_v1 }
  0x6b   : > { %594 = vrot.lane.b32.xlu0 %v586_v36, %s1292_s7 }
  0x6c   : > { %675 = vrot.lane.b32.xlu1 %v667_v38, %s1293_s23  ;;  %592 = vrot.lane.b32.xlu2 %v584_v33, %s1292_s7 }
  0x6f   : > { %v754_v46 = vld.sshfl [vmem:[#allocation1 + $0x10] sm:$0xff pattern:$0x73625140]  ;;  %v750_v47 = vld.sshfl [vmem:[#allocation1] sm:$0xff pattern:$0x73625140] }
  0x70   : > { %v756_v49 = vld.sshfl [vmem:[#allocation1 + $0x18] sm:$0xff pattern:$0x73625140]  ;;  %v752_v50 = vld.sshfl [vmem:[#allocation1 + $0x8] sm:$0xff pattern:$0x73625140] }
  0x71   : > { %832 = vst [vmem:[#allocation1] ss:$4 sm:$0xff] %v1419_v1 }
  0x73   : > { %580 = vrot.lane.b32.xlu0 %v579_v45, %s1288_s19 }
  0x74   : > { %663 = vrot.lane.b32.xlu1 %v662_v48, %s1294_s8  ;;  %677 = vrot.lane.b32.xlu2 %v669_v39, %s1293_s23  ;;  %s995_s8 = sshll.u32 %s991_s6, 4  ;;  %s996_s8 = int_to_ptr.hbm [resolvable:$true] %s995_s8 }
  0x75   : > { %s1230_s10 = sshra.s32 %s996_s8, 4  ;;  %s1231_s10 = int_to_ptr.hbm [resolvable:$true] %s1230_s10 }
  0x76   : > { %p1237_p0 = scmp.lt.s32.totalorder %s1231_s10, %s1596_s3 }
  0x78   : > { %v839_v57 = vld.sshfl [vmem:[#allocation1 + $0x18] sm:$0xff pattern:$0x73625140]  ;;  %v837_v59 = vld.sshfl [vmem:[#allocation1 + $0x10] sm:$0xff pattern:$0x73625140] }
  0x79   : > { %v835_v61 = vld.sshfl [vmem:[#allocation1 + $0x8] sm:$0xff pattern:$0x73625140]  ;;  %v833_v62 = vld.sshfl [vmem:[#allocation1] sm:$0xff pattern:$0x73625140] }
  0x7b   : > { %598 = vrot.lane.b32.xlu0 %v590_v35, %s1292_s7 }
  0x7c   : > { %679 = vrot.lane.b32.xlu1 %v671_v40, %s1293_s23  ;;  %596 = vrot.lane.b32.xlu2 %v588_v34, %s1292_s7  ;;  %s188_s7 = scalar_lea.vmem [#allocation5], %s1108_s30 }
  0x83   : > { %762 = vrot.lane.b32.xlu0 %v754_v46, %s1295_s11 }
  0x84   : > { %746 = vrot.lane.b32.xlu1 %v745_v53, %s1296_s17  ;;  %760 = vrot.lane.b32.xlu2 %v752_v50, %s1295_s11 }
  0x8b   : > { %758 = vrot.lane.b32.xlu0 %v750_v47, %s1295_s11 }
  0x8c   : > { %764 = vrot.lane.b32.xlu1 %v756_v49, %s1295_s11  ;;  %681 = vrot.lane.b32.xlu2 %v673_v37, %s1293_s23  ;;  %v211_v60 = vpop.permute.xlu2 %210  ;;  %s993_s23 = sshll.u32 %s188_s7, 4  ;;  %s1232_s11 = scalar_lea.hbm %s1231_s10, 24  ;;  %s994_s23 = int_to_ptr.vmem [resolvable:$true] %s993_s23 }
  0x8d   : > { %p1233_p6 = scmp.ne.s32.totalorder %s1231_s10, %s1232_s11  ;;  %p1238_p1 = scmp.lt.s32.totalorder %s1236_s20, %s1232_s11 }
  0x8f   : > { %p1234_p9 = pnand %p1233_p6, %p1370_p11  ;;  %p1239_p3 = por %p1238_p1, %p1237_p0 }
  0x91   : > { %p1235_p13 = pneg %p1234_p9 }
  0x93   : > { %847 = vrot.lane.b32.xlu0 %v839_v57, %s1297_s22  ;;  %p1240_p4 = pnand %p1239_p3, %p1235_p13 }
  0x94   : > { %829 = vrot.lane.b32.xlu1 %v828_v58, %s1298_s27  ;;  %845 = vrot.lane.b32.xlu2 %v837_v59, %s1297_s22 }
  0x9b   : > { %843 = vrot.lane.b32.xlu0 %v835_v61, %s1297_s22 }
  0x9c   : > { %841 = vrot.lane.b32.xlu2 %v833_v62, %s1297_s22 }
  0x9e   : > { %v344_v63 = vpop.permute.xlu2 %343 }
  0x9f   : > { %v197_v1 = vpop.permute.xlu1 %196 }
  0xa3   : > { %v213_v2 = vpop.permute.xlu0 %212 }
  0xa4   : > { %v218_v3 = vsel %vm216_vm2, %v211_v60, %v213_v2 }
  0xa5   : > { %v229_v5 = vsel %vm224_vm0, %v218_v3, 0 }
  0xa6   : > { %254 = vmatpush.bf16.msra.mxu1 %v229_v5  ;;  %v415_v6 = vpop.permute.xlu2 %414  ;;  %v1299_v5 = vmov 0  }
  0xa7   : > { %v209_v7 = vpop.permute.xlu1 %208  ;;  %1172 = vset.pattern.permute.xlu1 %v1299_v5  ;;  %1173 = vset.pattern.permute.xlu0 %v1299_v5 }
  0xa8   : > { %v217_v8 = vsel %vm216_vm2, %v209_v7, %v211_v60 }
  0xa9   : > { %1075 = vmatmul.msk.bf16.vlgmr.msra.gmra.mxu1 %vm220_vm1, %v197_v1  ;;  %v226_v10 = vsel %vm224_vm0, %v217_v8, 0 }
  0xaa   : > { %320 = vmatpush.bf16.msrb.mxu1 %v285_v4  ;;  %241 = vmatpush.bf16.msra.mxu0 %v226_v10  ;;  %v907_v4 = vld [vmem:[%s1595_s2] sm:$0xff] }
  0xab   : > { %v215_v11 = vpop.permute.xlu0 %214  ;;  %910 = vperm.xlu1 %1172, %v907_v4  }
  0xac   : > { %v219_v13 = vsel %vm216_vm2, %v213_v2, %v215_v11 }
  0xad   : > { %1074 = vmatmul.msk.bf16.vlgmr.msra.gmra.mxu0 %vm220_vm1, %v197_v1  ;;  %v232_v14 = vsel %vm224_vm0, %v219_v13, 0 }
  0xae   : > { %307 = vmatpush.bf16.msrb.mxu0 %v283_v9  ;;  %267 = vmatpush.bf16.msra.mxu2 %v232_v14  ;;  %v348_v15 = vpop.permute.xlu2 %347 }
  0xaf   : > { %v332_v16 = vpop.permute.xlu1 %331 }
  0xb1   : > { %1076 = vmatmul.msk.bf16.vlgmr.msra.gmra.mxu2 %vm220_vm1, %v197_v1 }
  0xb5   : > { %v346_v12 = vpop.permute.xlu0 %345 }
  0xb6   : > { %v352_v17 = vsel %vm351_vm3, %v344_v63, %v346_v12  ;;  %v353_v18 = vsel %vm351_vm3, %v346_v12, %v348_v15  ;;  %v1483_v19 = vpop.permute.xlu2 %497 }
  0xb7   : > { %v359_v20 = vsel %vm224_vm0, %v352_v17, 0  ;;  %v362_v21 = vsel %vm224_vm0, %v353_v18, 0 }
  0xb8   : > { %374 = vmatpush.bf16.msrb.mxu2 %v359_v20  ;;  %387 = vmatpush.bf16.msrb.mxu3 %v362_v21 }
  0xb9   : > { %1079 = vmatmul.msk.bf16.vlgmr.msrb.gmra.mxu1 %vm220_vm1, %v1417_v0 }
  0xbb   : > { %1081 = vmatmul.msk.bf16.vlgmr.msrb.gmra.mxu3 %vm220_vm1, %v332_v16 }
  0xbd   : > { %v350_v22 = vpop.permute.xlu0 %349  ;;  %1078 = vmatmul.msk.bf16.vlgmr.msrb.gmra.mxu0 %vm220_vm1, %v1417_v0 }
  0xbe   : > { %v354_v23 = vsel %vm351_vm3, %v348_v15, %v350_v22  ;;  %v431_v24 = vpop.permute.xlu1 %430  ;;  %v433_v25 = vpop.permute.xlu2 %432 }
  0xbf   : > { %v365_v26 = vsel %vm224_vm0, %v354_v23, 0  ;;  %v437_v27 = vsel %vm434_vm4, %v431_v24, %v433_v25 }
  0xc0   : > { %400 = vmatpush.bf16.msra.mxu0 %v365_v26  ;;  %v448_v28 = vsel %vm224_vm0, %v437_v27, 0 }
  0xc1   : > { %1080 = vmatmul.msk.bf16.vlgmr.msrb.gmra.mxu2 %vm220_vm1, %v332_v16  ;;  %483 = vmatpush.bf16.msra.mxu3 %v448_v28  ;;  %v296_v21 = vpop.f32.mrf.mxu3 }
  0xc5   : > { %v429_v29 = vpop.permute.xlu0 %428 }
  0xc6   : > { %v436_v30 = vsel %vm434_vm4, %v429_v29, %v431_v24  ;;  %v427_v31 = vpop.permute.xlu1 %426  ;;  %v593_v32 = vpop.permute.xlu2 %592 }
  0xc7   : > { %v445_v0 = vsel %vm224_vm0, %v436_v30, 0  ;;  %v435_v33 = vsel %vm434_vm4, %v427_v31, %v429_v29 }
  0xc8   : > { %v442_v34 = vsel %vm224_vm0, %v435_v33, 0  ;;  %470 = vmatpush.bf16.msra.mxu2 %v445_v0 }
  0xc9   : > { %457 = vmatpush.bf16.msra.mxu1 %v442_v34  ;;  %v298_v28 = vpop.f32.mrf.mxu3 }
  0xcb   : > { %1085 = vmatmul.msk.bf16.vlgmr.msra.gmra.mxu3 %vm220_vm1, %v415_v6 }
  0xcc   : > { %1083 = vmatmul.msk.bf16.vlgmr.msra.gmra.mxu1 %vm220_vm1, %v415_v6 }
  0xcd   : > { %v514_v35 = vpop.permute.xlu0 %513  ;;  %1082 = vmatmul.msk.bf16.vlgmr.msra.gmra.mxu0 %vm220_vm1, %v332_v16 }
  0xce   : > { %v516_v36 = vpop.permute.xlu1 %515  ;;  %v678_v39 = vpop.permute.xlu2 %677 }
  0xcf   : > { %v520_v37 = vsel %vm517_vm5, %v514_v35, %v516_v36 }
  0xd0   : > { %v531_v38 = vsel %vm224_vm0, %v520_v37, 0 }
  0xd1   : > { %566 = vmatpush.bf16.msrb.mxu2 %v531_v38 }
  0xd2   : > { %1084 = vmatmul.msk.bf16.vlgmr.msra.gmra.mxu2 %vm220_vm1, %v415_v6 }
  0xd5   : > { %v510_v40 = vpop.permute.xlu0 %509 }
  0xd6   : > { %v512_v41 = vpop.permute.xlu1 %511  ;;  %v597_v46 = vpop.permute.xlu2 %596 }
  0xd7   : > { %v518_v42 = vsel %vm517_vm5, %v510_v40, %v512_v41  ;;  %v519_v43 = vsel %vm517_vm5, %v512_v41, %v514_v35 }
  0xd8   : > { %v525_v44 = vsel %vm224_vm0, %v518_v42, 0  ;;  %v528_v45 = vsel %vm224_vm0, %v519_v43, 0 }
  0xd9   : > { %540 = vmatpush.bf16.msrb.mxu0 %v525_v44  ;;  %553 = vmatpush.bf16.msrb.mxu1 %v528_v45 }
  0xdc   : > { %1087 = vmatmul.msk.bf16.vlgmr.msrb.gmra.mxu1 %vm220_vm1, %v1483_v19 }
  0xdd   : > { %v595_v47 = vpop.permute.xlu0 %594  ;;  %1086 = vmatmul.msk.bf16.vlgmr.msrb.gmra.mxu0 %vm220_vm1, %v1483_v19 }
  0xde   : > { %v601_v48 = vsel %vm600_vm6, %v593_v32, %v595_v47  ;;  %v602_v49 = vsel %vm600_vm6, %v595_v47, %v597_v46  ;;  %v676_v50 = vpop.permute.xlu1 %675  ;;  %v761_v55 = vpop.permute.xlu2 %760 }
  0xdf   : > { %v608_v51 = vsel %vm224_vm0, %v601_v48, 0  ;;  %v611_v52 = vsel %vm224_vm0, %v602_v49, 0  ;;  %v684_v53 = vsel %vm683_vm7, %v676_v50, %v678_v39 }
  0xe0   : > { %v691_v54 = vsel %vm224_vm0, %v684_v53, 0  ;;  %623 = vmatpush.bf16.msrb.mxu3 %v608_v51  ;;  %636 = vmatpush.bf16.msra.mxu0 %v611_v52 }
  0xe1   : > { %706 = vmatpush.bf16.msra.mxu2 %v691_v54 }
  0xe2   : > { %1088 = vmatmul.msk.bf16.vlgmr.msrb.gmra.mxu2 %vm220_vm1, %v1483_v19 }
  0xe5   : > { %v581_v56 = vpop.permute.xlu0 %580 }
  0xe6   : > { %v664_v57 = vpop.permute.xlu1 %663  ;;  %1089 = vmatmul.msk.bf16.vlgmr.msrb.gmra.mxu3 %vm220_vm1, %v581_v56  ;;  %v682_v58 = vpop.permute.xlu2 %681 }
  0xed   : > { %v599_v59 = vpop.permute.xlu0 %598  ;;  %1090 = vmatmul.msk.bf16.vlgmr.msra.gmra.mxu0 %vm220_vm1, %v581_v56 }
  0xee   : > { %v603_v60 = vsel %vm600_vm6, %v597_v46, %v599_v59  ;;  %v680_v61 = vpop.permute.xlu1 %679  ;;  %v846_v12 = vpop.permute.xlu2 %845 }
  0xef   : > { %v614_v62 = vsel %vm224_vm0, %v603_v60, 0  ;;  %v685_v63 = vsel %vm683_vm7, %v678_v39, %v680_v61  ;;  %v686_v1 = vsel %vm683_vm7, %v680_v61, %v682_v58 }
  0xf0   : > { %v694_v2 = vsel %vm224_vm0, %v685_v63, 0  ;;  %649 = vmatpush.bf16.msra.mxu1 %v614_v62  ;;  %v697_v3 = vsel %vm224_vm0, %v686_v1, 0 }
  0xf1   : > { %719 = vmatpush.bf16.msra.mxu3 %v694_v2  ;;  %732 = vmatpush.bf16.msrb.mxu0 %v697_v3 }
  0xf2   : > { %1092 = vmatmul.msk.bf16.vlgmr.msra.gmra.mxu2 %vm220_vm1, %v664_v57 }
  0xf3   : > { %1091 = vmatmul.msk.bf16.vlgmr.msra.gmra.mxu1 %vm220_vm1, %v581_v56 }
  0xf5   : > { %v763_v6 = vpop.permute.xlu0 %762 }
  0xf6   : > { %v768_v7 = vsel %vm766_vm8, %v761_v55, %v763_v6  ;;  %v747_v8 = vpop.permute.xlu1 %746  ;;  %1093 = vmatmul.msk.bf16.vlgmr.msra.gmra.mxu3 %vm220_vm1, %v664_v57  ;;  %v842_v20 = vpop.permute.xlu2 %841 }
  0xf7   : > { %v777_v9 = vsel %vm224_vm0, %v768_v7, 0 }
  0xf8   : > { %802 = vmatpush.bf16.msrb.mxu2 %v777_v9 }
  0xfd   : > { %v759_v10 = vpop.permute.xlu0 %758  ;;  %1094 = vmatmul.msk.bf16.vlgmr.msrb.gmra.mxu0 %vm220_vm1, %v664_v57 }
  0xfe   : > { %v767_v11 = vsel %vm766_vm8, %v759_v10, %v761_v55  ;;  %v765_v13 = vpop.permute.xlu1 %764 }
  0xff   : > { %v774_v14 = vsel %vm224_vm0, %v767_v11, 0  ;;  %v769_v15 = vsel %vm766_vm8, %v763_v6, %v765_v13 }
 0x100   : > { %v780_v16 = vsel %vm224_vm0, %v769_v15, 0  ;;  %789 = vmatpush.bf16.msrb.mxu1 %v774_v14 }
 0x101   : > { %815 = vmatpush.bf16.msrb.mxu3 %v780_v16 }
 0x102   : > { %1096 = vmatmul.msk.bf16.vlgmr.msrb.gmra.mxu2 %vm220_vm1, %v747_v8 }
 0x103   : > { %1095 = vmatmul.msk.bf16.vlgmr.msrb.gmra.mxu1 %vm220_vm1, %v747_v8 }
 0x105   : > { %v848_v17 = vpop.permute.xlu0 %847 }
 0x106   : > { %v852_v18 = vsel %vm849_vm9, %v846_v12, %v848_v17  ;;  %1097 = vmatmul.msk.bf16.vlgmr.msrb.gmra.mxu3 %vm220_vm1, %v747_v8  ;;  %v830_v27 = vpop.permute.xlu1 %829 }
 0x107   : > { %v863_v19 = vsel %vm224_vm0, %v852_v18, 0 }
 0x108   : > { %898 = vmatpush.bf16.msra.mxu2 %v863_v19 }
 0x10d   : > { %v844_v22 = vpop.permute.xlu0 %843 }
 0x10e   : > { %v851_v23 = vsel %vm849_vm9, %v844_v22, %v846_v12  ;;  %v850_v24 = vsel %vm849_vm9, %v842_v20, %v844_v22 }
 0x10f   : > { %v860_v25 = vsel %vm224_vm0, %v851_v23, 0  ;;  %v857_v26 = vsel %vm224_vm0, %v850_v24, 0 }
 0x110   : > { %872 = vmatpush.bf16.msra.mxu0 %v857_v26  ;;  %885 = vmatpush.bf16.msra.mxu1 %v860_v25 }
 0x112   : > { %1100 = vmatmul.msk.bf16.vlgmr.msra.gmra.mxu2 %vm220_vm1, %v830_v27 }
 0x113   : > { %1098 = vmatmul.msk.bf16.vlgmr.msra.gmra.mxu0 %vm220_vm1, %v830_v27  ;;  %1099 = vmatmul.msk.bf16.vlgmr.msra.gmra.mxu1 %vm220_vm1, %v830_v27 }
 0x11d   : > { %v911_v28 = vpop.permute.xlu1 %910 }
 0x126   : > { %v256_v29 = vpop.f32.mrf.mxu1 }
 0x12a   : > { %v243_v30 = vpop.f32.mrf.mxu0 }
 0x12b   : > { %v297_v31 = vadd.f32 %v296_v21, %v243_v30 }
 0x12e   : > { %v258_v32 = vpop.f32.mrf.mxu1 }
 0x132   : > { %v245_v0 = vpop.f32.mrf.mxu0 }
 0x134   : > { %v269_v33 = vpop.f32.mrf.mxu2 }
 0x136   : > { %v322_v34 = vpop.f32.mrf.mxu1 }
 0x137   : > { %v323_v35 = vadd.f32 %v322_v34, %v269_v33 }
 0x13a   : > { %v309_v36 = vpop.f32.mrf.mxu0 }
 0x13b   : > { %v310_v37 = vadd.f32 %v309_v36, %v256_v29 }
 0x13c   : > { %v271_v38 = vpop.f32.mrf.mxu2 }
 0x13e   : > { %v389_v39 = vpop.f32.mrf.mxu3  ;;  %v324_v40 = vpop.f32.mrf.mxu1 }
 0x13f   : > { %v407_v41 = vadd.f32 %v389_v39, %v310_v37 }
 0x142   : > { %v311_v42 = vpop.f32.mrf.mxu0 }
 0x144   : > { %v376_v43 = vpop.f32.mrf.mxu2 }
 0x145   : > { %v406_v44 = vadd.f32 %v376_v43, %v297_v31 }
 0x146   : > { %v391_v45 = vpop.f32.mrf.mxu3 }
 0x149   : > { %v459_v46 = vpop.f32.mrf.mxu1 }
 0x14a   : > { %v402_v47 = vpop.f32.mrf.mxu0  ;;  %v489_v14 = vadd.f32 %v459_v46, %v406_v44 }
 0x14b   : > { %v408_v15 = vadd.f32 %v402_v47, %v323_v35 }
 0x14c   : > { %v378_v48 = vpop.f32.mrf.mxu2 }
 0x14e   : > { %v485_v49 = vpop.f32.mrf.mxu3 }
 0x14f   : > { %v491_v21 = vadd.f32 %v485_v49, %v408_v15 }
 0x151   : > { %v461_v50 = vpop.f32.mrf.mxu1 }
 0x152   : > { %v404_v51 = vpop.f32.mrf.mxu0 }
 0x155   : > { %v472_v52 = vpop.f32.mrf.mxu2 }
 0x156   : > { %v487_v53 = vpop.f32.mrf.mxu3  ;;  %v490_v11 = vadd.f32 %v472_v52, %v407_v41 }
 0x159   : > { %v555_v54 = vpop.f32.mrf.mxu1 }
 0x15a   : > { %v542_v55 = vpop.f32.mrf.mxu0  ;;  %v573_v12 = vadd.f32 %v555_v54, %v490_v11 }
 0x15b   : > { %v572_v17 = vadd.f32 %v542_v55, %v489_v14 }
 0x15d   : > { %v474_v56 = vpop.f32.mrf.mxu2 }
 0x161   : > { %v557_v57 = vpop.f32.mrf.mxu1 }
 0x162   : > { %v544_v58 = vpop.f32.mrf.mxu0 }
 0x165   : > { %v568_v59 = vpop.f32.mrf.mxu2 }
 0x166   : > { %v574_v25 = vadd.f32 %v568_v59, %v491_v21 }
 0x169   : > { %v625_v60 = vpop.f32.mrf.mxu3 }
 0x16a   : > { %v638_v61 = vpop.f32.mrf.mxu0  ;;  %v655_v19 = vadd.f32 %v625_v60, %v572_v17 }
 0x16b   : > { %v656_v20 = vadd.f32 %v638_v61, %v573_v12 }
 0x16d   : > { %v570_v62 = vpop.f32.mrf.mxu2 }
 0x170   : > { %v651_v63 = vpop.f32.mrf.mxu1 }
 0x171   : > { %v627_v1 = vpop.f32.mrf.mxu3  ;;  %v657_v29 = vadd.f32 %v651_v63, %v574_v25 }
 0x172   : > { %v640_v2 = vpop.f32.mrf.mxu0 }
 0x175   : > { %v708_v3 = vpop.f32.mrf.mxu2 }
 0x176   : > { %v738_v22 = vadd.f32 %v708_v3, %v655_v19 }
 0x178   : > { %v653_v4 = vpop.f32.mrf.mxu1 }
 0x179   : > { %v721_v5 = vpop.f32.mrf.mxu3 }
 0x17a   : > { %v734_v6 = vpop.f32.mrf.mxu0  ;;  %v739_v23 = vadd.f32 %v721_v5, %v656_v20 }
 0x17b   : > { %v740_v34 = vadd.f32 %v734_v6, %v657_v29 }
 0x17d   : > { %v710_v7 = vpop.f32.mrf.mxu2 }
 0x180   : > { %v791_v8 = vpop.f32.mrf.mxu1 }
 0x181   : > { %v723_v9 = vpop.f32.mrf.mxu3  ;;  %v821_v26 = vadd.f32 %v791_v8, %v738_v22 }
 0x182   : > { %v736_v10 = vpop.f32.mrf.mxu0 }
 0x185   : > { %v804_v13 = vpop.f32.mrf.mxu2 }
 0x186   : > { %v822_v27 = vadd.f32 %v804_v13, %v739_v23 }
 0x188   : > { %v793_v16 = vpop.f32.mrf.mxu1 }
 0x189   : > { %v817_v18 = vpop.f32.mrf.mxu3 }
 0x18a   : > { %v823_v37 = vadd.f32 %v817_v18, %v740_v34 }
 0x18d   : > { %v806_v24 = vpop.f32.mrf.mxu2 }
 0x190   : > { %v874_v30 = vpop.f32.mrf.mxu0  ;;  %v887_v31 = vpop.f32.mrf.mxu1 }
 0x191   : > { %v904_v32 = vadd.f32 %v874_v30, %v821_v26  ;;  %v905_v0 = vadd.f32 %v887_v31, %v822_v27  ;;  %v819_v33 = vpop.f32.mrf.mxu3 }
 0x193   : > { %v1549_v35 = vadd.f32 %v911_v28, %v904_v32  ;;  %v914_v36 = vadd.f32 %v911_v28, %v905_v0 }
 0x195   : > { %v1101_v38 = vmul.f32 -1.442695, %v1549_v35  ;;  %v1102_v39 = vmul.f32 -1.442695, %v914_v36  ;;  %v900_v40 = vpop.f32.mrf.mxu2 }
 0x196   : > { %v906_v41 = vadd.f32 %v900_v40, %v823_v37 }
 0x197   : > { %1174 = vpow2.f32 %v1101_v38 }
 0x198   : > { %1176 = vpow2.f32 %v1102_v39  ;;  %v1552_v42 = vadd.f32 %v911_v28, %v906_v41  ;;  %v876_v43 = vpop.f32.mrf.mxu0  ;;  %v889_v44 = vpop.f32.mrf.mxu1 }
 0x19a   : > { %v1103_v45 = vmul.f32 -1.442695, %v1552_v42 }
 0x19c   : > { %1178 = vpow2.f32 %v1103_v45 }
 0x19d   : > { %v1175_v46 = vpop.eup %1174  ;;  %v902_v47 = vpop.f32.mrf.mxu2 }
 0x19e   : > { %v1177_v48 = vpop.eup %1176  ;;  %v925_v49 = vadd.f32 1.0, %v1175_v46 }
 0x19f   : > { %v926_v50 = vadd.f32 1.0, %v1177_v48 }
 0x1a0   : > { %1180 = vrcp.f32 %v925_v49  ;;  %v937_v58 = vand.u32 2147483647, %v925_v49  ;;  %v939_v59 = vand.u32 2147483648, %v925_v49  ;;  %vm933_vm12 = vweird.f32 %v925_v49 }
 0x1a1   : > { %1182 = vrcp.f32 %v926_v50  ;;  %v952_v61 = vand.u32 2147483647, %v926_v50  ;;  %v954_v1 = vand.u32 2147483648, %v926_v50  ;;  %vm948_vm14 = vweird.f32 %v926_v50 }
 0x1a2   : > { %v1179_v51 = vpop.eup %1178  ;;  %vm938_vm13 = vcmp.eq.f32.partialorder %v937_v58, 8.507059e+37  ;;  %v940_v5 = vor.u32 1.1754944e-38, %v939_v59 }
 0x1a3   : > { %v927_v52 = vadd.f32 1.0, %v1179_v51  ;;  %vm953_vm0 = vcmp.eq.f32.partialorder %v952_v61, 8.507059e+37  ;;  %v955_v9 = vor.u32 1.1754944e-38, %v954_v1 }
 0x1a5   : > { %1184 = vrcp.f32 %v927_v52  ;;  %v967_v10 = vand.u32 2147483647, %v927_v52  ;;  %v969_v11 = vand.u32 2147483648, %v927_v52  ;;  %vm963_vm3 = vweird.f32 %v927_v52 }
 0x1a6   : > { %v1181_v53 = vpop.eup %1180 }
 0x1a7   : > { %v1183_v54 = vpop.eup %1182  ;;  %v929_v55 = vmul.f32 %v1181_v53, %v925_v49  ;;  %vm934_vm10 = vweird.f32 %v1181_v53  ;;  %v970_v19 = vor.u32 1.1754944e-38, %v969_v11  ;;  %vm968_vm5 = vcmp.eq.f32.partialorder %v967_v10, 8.507059e+37 }
 0x1a8   : > { %v944_v56 = vmul.f32 %v1183_v54, %v926_v50  ;;  %vm949_vm11 = vweird.f32 %v1183_v54  ;;  %vm935_vm15 = vmor %vm933_vm12, %vm934_vm10 }
 0x1a9   : > { %v930_v57 = vsub.f32 1.0, %v929_v55  ;;  %vm950_vm1 = vmor %vm948_vm14, %vm949_vm11 }
 0x1aa   : > { %v945_v60 = vsub.f32 1.0, %v944_v56 }
 0x1ab   : > { %v1185_v62 = vpop.eup %1184  ;;  %v931_v63 = vmul.f32 %v1181_v53, %v930_v57 }
 0x1ac   : > { %v946_v2 = vmul.f32 %v1183_v54, %v945_v60  ;;  %v959_v3 = vmul.f32 %v1185_v62, %v927_v52  ;;  %vm964_vm2 = vweird.f32 %v1185_v62 }
 0x1ad   : > { %v932_v4 = vadd.f32 %v1181_v53, %v931_v63  ;;  %vm965_vm4 = vmor %vm963_vm3, %vm964_vm2 }
 0x1ae   : > { %v947_v6 = vadd.f32 %v1183_v54, %v946_v2  ;;  %v960_v7 = vsub.f32 1.0, %v959_v3 }
 0x1af   : > { %v936_v8 = vsel %vm935_vm15, %v1181_v53, %v932_v4 }
 0x1b0   : > { %v941_v13 = vsel %vm938_vm13, %v940_v5, %v936_v8  ;;  %v951_v14 = vsel %vm950_vm1, %v1183_v54, %v947_v6  ;;  %v961_v15 = vmul.f32 %v1185_v62, %v960_v7 }
 0x1b1   : > { %v956_v16 = vsel %vm953_vm0, %v955_v9, %v951_v14  ;;  %v973_v12 = vmul.f32 %v941_v13, %v1549_v35 }
 0x1b2   : > { %v974_v17 = vmul.f32 %v956_v16, %v914_v36  ;;  %v962_v18 = vadd.f32 %v1185_v62, %v961_v15 }
 0x1b3   : > { %976 = vst [vmem:[%s188_s7] sm:$0xff] %v973_v12 }
 0x1b4   : > { %977 = vst [vmem:[%s188_s7 + $0x8] sm:$0xff] %v974_v17  ;;  %v966_v20 = vsel %vm965_vm4, %v1185_v62, %v962_v18 }
 0x1b5   : > { %v971_v21 = vsel %vm968_vm5, %v970_v19, %v966_v20 }
 0x1b6   : > { %v975_v22 = vmul.f32 %v971_v21, %v1552_v42 }
 0x1b8   : > { %978 = vst [vmem:[%s188_s7 + $0x10] sm:$0xff] %v975_v22 }
 0x1b9   : > { %1243 = shalt.err (!%p1240_p4)
}
 0x1ba   : > { %1112 = dma.vmem_to_hbm [thread:$0]  (%p1370_p11), %s994_s23, 384, %s996_s8, %s980_s9  }
 0x1bb PF: > { %s1007_s26 = sand.u32 1, %s1270_s12   ;;  %p1602_p7 = scmp.ge.s32.totalorder %s1282_s15, 2 }
 0x1bc   : > { %s1008_s28 = scalar_lea.sflag [#allocation4], %s1007_s26 }
 0x1bd   : > { %p1119_p5 = pnand %p1602_p7, %p1374_p12 }
 0x1bf   : > { %p1120_p8 = pneg %p1119_p5 }
 0x1c1   : > { %1265 = dma.done.wait (%p1120_p8), %s1008_s28, 384  }
 0x1c2   : > { %1267 = vsyncadd (%p1120_p8), %s1008_s28, 4294966912  ;;  %p16_p10 = scmp.ge.s32.totalorder %s1345_s18, 4   ;;  %s1603_s12 = smov %s1274_s13 }
 0x1c3   : > { %s1604_s13 = smov %s1278_s14  ;;  %s1605_s14 = smov %s1357_s21 }
 0x1c4   : > { %s1606_s15 = smov %s1345_s18  ;;  %18 = sbr.rel (!%p16_p10) target bundleno = 5 (0x5), region = 77 }
 0x1c9   :  { %1014 = vsyncpa [#allocation3], 1 }
 0x1ca   :  { %1016 = vsyncpa [#allocation3 + $0x1], 1 }
 0x1cb   :  { %1017 = vsyncpa [#allocation4], 1 }
 0x1cc   :  { %1019 = vsyncpa [#allocation4 + $0x1], 1 }

</bundles_post_ra>
